<compile_context>
chip_gen: v6e
topology: v6e:2x2x1
jax: 0.10.0
libtpu: 0.0.40
codegen_flags: <defaults>
</compile_context>

<pallas_src>
import jax
import jax.numpy as jnp
from jax.experimental import pallas as pl
from jax.experimental.pallas import tpu as pltpu


def _svm_linear_kernel(x_ref, w_ref, b_ref, o_ref):
    # x_ref: (TB, D) in the streaming dtype   w_ref: (2, D) compute dtype
    # b_ref: (1, 2) f32 resident               o_ref: (TB, 2) f32
    x = x_ref[...]
    w = w_ref[...]
    if x.dtype != w.dtype:
        # Only int/bool (or f16) seq hits this: the `.float()` upcast, in-kernel.
        x = x.astype(w.dtype)
    precision = (
        jax.lax.Precision.HIGHEST if x.dtype == jnp.float32
        else jax.lax.Precision.DEFAULT
    )
    # x @ w.T without a wrapper-side transpose: contract D (axis 1) of both.
    acc = jax.lax.dot_general(
        x, w, (((1,), (1,)), ((), ())),
        preferred_element_type=jnp.float32,
        precision=precision,
    )                                           # (TB, 2) f32
    o_ref[...] = (acc + b_ref[...]).astype(o_ref.dtype)


def _vmem_capacity_bytes():
    """Physical VMEM of the current generation; conservative fallback = 64 MiB (v7x/TC)."""
    try:
        cap = int(pltpu.get_tpu_info().vmem_capacity_bytes)
        if cap > 0:
            return cap
    except Exception:
        pass
    return 64 * 1024 * 1024


def _pick_batch_tile(B, D, x_itemsize, compute_itemsize, x_budget_bytes):
    """Largest multiple-of-8 batch tile whose pipelined footprint fits the budget."""
    x_itemsize = max(int(x_itemsize), 1)
    bytes_per_row = 2 * D * x_itemsize                 # double-buffered x block
    if compute_itemsize > x_itemsize:
        bytes_per_row += D * int(compute_itemsize)     # one live in-kernel upcast temp
    bytes_per_row += 2 * 2 * 4                         # double-buffered (TB, 2) f32 output
    max_rows = max(8, x_budget_bytes // max(bytes_per_row, 1))
    if B <= max_rows:
        return B          # full-batch block (block == full array dim is always legal)
    return max(8, (max_rows // 8) * 8)   # multiple of 8 satisfies the (8,128) rule


def svm_forward(seq, Gdata, weight, bias):
    """Pallas equivalent of SVM.forward.

    seq:    [B, seq_length]  (float / bf16 / int dtype; `.float()` semantics preserved)
    Gdata:  ignored (unused in the reference forward)
    weight: [2, seq_length]  (PyTorch nn.Linear weight layout, used as-is)
    bias:   [2]
    returns [B, 2] float32
    """
    del Gdata  # unused, matching the PyTorch module
    B, D = seq.shape
    x_dtype = jnp.dtype(seq.dtype)

    # Compute dtype: bf16 streams straight into the MXU (f32 accumulation via
    # preferred_element_type); everything else runs the f32 path.
    if x_dtype == jnp.bfloat16:
        compute_dtype = jnp.bfloat16
    else:
        compute_dtype = jnp.float32
    compute_itemsize = jnp.dtype(compute_dtype).itemsize

    # Generation-aware budgets: ~40 MiB x budget on 128 MiB parts (v5e/v6e),
    # ~24 MiB on 64 MiB parts (v7x per-TC).
    vmem_cap = _vmem_capacity_bytes()
    if vmem_cap >= 100 * 1024 * 1024:
        x_budget_bytes = 40 * 1024 * 1024
        vmem_limit_bytes = 96 * 1024 * 1024
    else:
        x_budget_bytes = 24 * 1024 * 1024
        vmem_limit_bytes = 48 * 1024 * 1024

    TB = _pick_batch_tile(B, D, x_dtype.itemsize, compute_itemsize, x_budget_bytes)
    grid = (pl.cdiv(B, TB),)

    w = weight.astype(compute_dtype)            # tiny (2, D) cast, once, outside the loop
    b = bias.astype(jnp.float32).reshape(1, 2)  # resident (1, 2) VMEM block

    cost = pl.CostEstimate(
        flops=4 * B * D,                                        # 2*B*D MACs -> 2 outputs
        transcendentals=0,
        bytes_accessed=(B * D * x_dtype.itemsize                # x stream (dominant)
                        + B * 2 * 4                             # output
                        + 2 * D * compute_itemsize              # resident weight
                        + 8),                                   # bias
    )

    # TODO(synk): add a trailing "arbitrary" K axis over seq_length with an f32
    # VMEM accumulator if D ever grows beyond the per-tile VMEM row budget.
    out = pl.pallas_call(
        _svm_linear_kernel,
        out_shape=jax.ShapeDtypeStruct((B, 2), jnp.float32),
        grid_spec=pl.GridSpec(
            grid=grid,
            in_specs=[
                pl.BlockSpec((TB, D), lambda i: (i, 0)),   # x: tiled over batch
                pl.BlockSpec((2, D), lambda i: (0, 0)),    # weight: resident
                pl.BlockSpec((1, 2), lambda i: (0, 0)),    # bias: resident
            ],
            out_specs=pl.BlockSpec((TB, 2), lambda i: (i, 0)),
        ),
        compiler_params=pltpu.CompilerParams(
            dimension_semantics=("parallel",),   # megacore-shardable batch axis
            vmem_limit_bytes=vmem_limit_bytes,
        ),
        cost_estimate=cost,
    )(seq, w, b)
    return out


if __name__ == "__main__":
    key = jax.random.PRNGKey(0)
    k_seq, k_w, k_b, k_g = jax.random.split(key, 4)

    batch = 8
    seq_length = 32  # args.seq_length

    # Deterministic synthetic parameters (shapes from nn.Linear(seq_length, 2)).
    weight = jax.random.normal(k_w, (2, seq_length), dtype=jnp.float32) * 0.1
    bias = jax.random.normal(k_b, (2,), dtype=jnp.float32) * 0.1

    # Example inputs.
    seq = jax.random.normal(k_seq, (batch, seq_length), dtype=jnp.float32)
    Gdata = jax.random.normal(k_g, (batch, 4), dtype=jnp.float32)  # unused

    out = svm_forward(seq, Gdata, weight, bias)
    out = jax.block_until_ready(out)

    # Sanity check against plain JAX reference.
    ref = seq.astype(jnp.float32) @ weight.T + bias
    assert out.shape == (batch, 2)
    assert jnp.allclose(out, ref, atol=1e-5, rtol=1e-5)

    print("KERNEL_OK")
</pallas_src>

<mosaic_0001>
module attributes {stable_mosaic.version = 11 : i64} {
  func.func @_svm_linear_kernel(%arg0: i32, %arg1: memref<8x32xf32, #tpu.memory_space<vmem>>, %arg2: memref<2x32xf32, #tpu.memory_space<vmem>>, %arg3: memref<1x2xf32, #tpu.memory_space<vmem>>, %arg4: memref<8x2xf32, #tpu.memory_space<vmem>>) attributes {dimension_semantics = [#tpu.dimension_semantics<parallel>], iteration_bounds = array<i64: 1>, scalar_prefetch = 0 : i64, scratch_operands = 0 : i64, tpu.core_type = #tpu.core_type<tc>, window_params = [{transform_indices = @transform_0, window_bounds = array<i64: 8, 32>}, {pipeline_mode = #tpu.pipeline_mode<synchronous>, transform_indices = @transform_1, window_bounds = array<i64: 2, 32>}, {pipeline_mode = #tpu.pipeline_mode<synchronous>, transform_indices = @transform_2, window_bounds = array<i64: 1, 2>}, {transform_indices = @transform_3, window_bounds = array<i64: 8, 2>}]} {
    %c0 = arith.constant 0 : index
    %c0_0 = arith.constant 0 : index
    %0 = vector.load %arg1[%c0, %c0_0] : memref<8x32xf32, #tpu.memory_space<vmem>>, vector<8x32xf32>
    %c0_1 = arith.constant 0 : index
    %c0_2 = arith.constant 0 : index
    %1 = vector.load %arg2[%c0_1, %c0_2] : memref<2x32xf32, #tpu.memory_space<vmem>>, vector<2x32xf32>
    %cst = arith.constant dense<0.000000e+00> : vector<8x2xf32>
    %2 = tpu.matmul %0, %1, %cst {dimension_numbers = #tpu.dot_dimension_numbers<[1], [1], [0], [0], [0, 0, 1, 0], [], []>, precision = #tpu.contract_precision<fp32>} : vector<8x32xf32>, vector<2x32xf32>, vector<8x2xf32> -> vector<8x2xf32>
    %c0_3 = arith.constant 0 : index
    %c0_4 = arith.constant 0 : index
    %3 = vector.load %arg3[%c0_3, %c0_4] : memref<1x2xf32, #tpu.memory_space<vmem>>, vector<1x2xf32>
    %4 = vector.broadcast %3 : vector<1x2xf32> to vector<8x2xf32>
    %5 = arith.addf %2, %4 : vector<8x2xf32>
    %c0_5 = arith.constant 0 : index
    %c0_6 = arith.constant 0 : index
    %6 = vector.load %arg4[%c0_5, %c0_6] : memref<8x2xf32, #tpu.memory_space<vmem>>, vector<8x2xf32>
    tpu.vector_store %arg4[%c0_5, %c0_6], %5 {strides = array<i32>} : memref<8x2xf32, #tpu.memory_space<vmem>>, vector<8x2xf32>,
    return
  }
  func.func @transform_0(%arg0: i32) -> (i32, i32) {
    %c0_i32 = arith.constant 0 : i32
    %c0_i32_0 = arith.constant 0 : i32
    return %arg0, %c0_i32 : i32, i32
  }
  func.func @transform_1(%arg0: i32) -> (i32, i32) {
    %c0_i32 = arith.constant 0 : i32
    %c0_i32_0 = arith.constant 0 : i32
    %c0_i32_1 = arith.constant 0 : i32
    return %c0_i32, %c0_i32_0 : i32, i32
  }
  func.func @transform_2(%arg0: i32) -> (i32, i32) {
    %c0_i32 = arith.constant 0 : i32
    %c0_i32_0 = arith.constant 0 : i32
    %c0_i32_1 = arith.constant 0 : i32
    return %c0_i32, %c0_i32_0 : i32, i32
  }
  func.func @transform_3(%arg0: i32) -> (i32, i32) {
    %c0_i32 = arith.constant 0 : i32
    %c0_i32_0 = arith.constant 0 : i32
    return %arg0, %c0_i32 : i32, i32
  }
}

</mosaic_0001>

<bundles_post_ra>
// kernel: tpu_custom_call.1
= control target key start
LH: loop header
LB: loop body
LE: loop exit
PB: predicated region body
PF: predicated region fallthrough
CT: control target
= control target key end

     0   :  { %8 = vsyncpa [#allocation3], 0  ;;  %s641_s0 = inlined_call_operand.hbm [shape: f32[8,32], index: 0, kind: input, shape index: {}]   ;;  %s642_s1 = inlined_call_operand.hbm [shape: f32[2,32], index: 1, kind: input, shape index: {}]   ;;  %s643_s2 = inlined_call_operand.vmem [shape: f32[1,2], index: 2, kind: input, shape index: {}]   ;;  %s644_s3 = inlined_call_operand.vmem [shape: f32[8,2], index: 3, kind: output, shape index: {}]  }
   0x1   :  { %9 = vsyncpa [#allocation5], 0  ;;  %s599_s12 = smov [#allocation2]   ;;  %s600_s14 = smov [#allocation4]  }
   0x2   :  { %s16_s13 = sshll.u32 %s599_s12, 4  ;;  %s26_s15 = sshll.u32 %s600_s14, 4  ;;  %s17_s13 = int_to_ptr.vmem [resolvable:$true] %s16_s13  ;;  %s27_s15 = int_to_ptr.vmem [resolvable:$true] %s26_s15 }
   0x3   :  { %s563_s16 = scalar_lea.vmem %s17_s13, 128  ;;  %p568_p1 = scmp.lt.s32.totalorder %s17_s13, %s17_s13 }
   0x4   :  { %p564_p0 = scmp.ne.s32.totalorder %s17_s13, %s563_s16  ;;  %p569_p2 = scmp.lt.s32.totalorder %s563_s16, %s563_s16 }
   0x6   :  { %p570_p3 = por %p569_p2, %p568_p1 }
   0x8   :  { %p571_p4 = pnand %p570_p3, %p564_p0 }
   0xa   :  { %574 = shalt.err (!%p571_p4)
}
   0xb   :  { %19 = dma.hbm_to_vmem [thread:$0]  %s641_s0, 128, %s17_s13, [#allocation3]  }
   0xc   :  { %s583_s19 = scalar_lea.vmem %s27_s15, 32  ;;  %p588_p6 = scmp.lt.s32.totalorder %s27_s15, %s27_s15 }
   0xd   :  { %p584_p5 = scmp.ne.s32.totalorder %s27_s15, %s583_s19  ;;  %p589_p7 = scmp.lt.s32.totalorder %s583_s19, %s583_s19 }
   0xf   :  { %p590_p8 = por %p589_p7, %p588_p6 }
  0x11   :  { %p591_p9 = pnand %p590_p8, %p584_p5 }
  0x13   :  { %594 = shalt.err (!%p591_p9)
}
  0x14   :  { %29 = dma.hbm_to_vmem [thread:$0]  %s642_s1, 32, %s27_s15, [#allocation5]  }
  0x15   :  { %595 = dma.done.wait [#allocation3], 128  }
  0x16   :  { %596 = vsyncadd [#allocation3], 4294967168 }
  0x17   :  { %597 = dma.done.wait [#allocation5], 32  }
  0x18   :  { %598 = vsyncadd [#allocation5], 4294967264  ;;  %v601_v0 = vmov 0.0   ;;  %vm602_vm0 = vmmov 0   ;;  %vm47_vm1 = vcmask 261120   ;;  %v38_v2 = vld [vmem:[#allocation2] sm:$0xff] }
  0x19   :  { %521 = vmatprep.subr.mxu0 %v601_v0  ;;  %523 = vmatprep.mubr.msk.f32.mxu0 %vm602_vm0, %v601_v0  ;;  %v39_v1 = vld [vmem:[#allocation4] sm:$0x3]  ;;  %v49_v4 = vsel %vm47_vm1, %v38_v2, 0  ;;  %v508_v15 = vld [vmem:[%s643_s2] ss:$0 sm:$0xff]  ;;  %vm500_vm2 = vcmask 15360  }
  0x1a   :  { %526 = vmatprep.subr.mxu1 %v601_v0  ;;  %528 = vmatprep.mubr.msk.f32.mxu1 %vm602_vm0, %v601_v0  ;;  %v52_v3 = vsel %vm47_vm1, %v39_v1, 0  ;;  %v120_v6 = vand.u32 4294901760, %v49_v4 }
  0x1b   :  { %v85_v5 = vand.u32 4294901760, %v52_v3 }
  0x1c   :  { %v121_v7 = vsub.f32 %v49_v4, %v120_v6 }
  0x1d   :  { %522 = vmatpush3.xpose.msra.mxu0 %v85_v5  ;;  %v162_v8 = vsub.f32 %v52_v3, %v85_v5 }
  0x1e   :  { %531 = vmatprep.subr.mxu0 %v601_v0  ;;  %v122_v9 = vand.u32 4294901760, %v121_v7 }
  0x1f   :  { %v163_v10 = vand.u32 4294901760, %v162_v8 }
  0x20   :  { %v123_v11 = vsub.f32 %v121_v7, %v122_v9 }
  0x21   :  { %v164_v12 = vsub.f32 %v162_v8, %v163_v10 }
  0x22   :  { %v124_v13 = vand.u32 4294901760, %v123_v11 }
  0x23   :  { %v165_v14 = vand.u32 4294901760, %v164_v12 }
  0x24   :  { %524 = vmatmul.mubr.f32.vlgmr.msra.gmra.mxu0 %v124_v13 }
  0x25   :  { %527 = vmatpush3.xpose.msra.mxu1 %v165_v14  ;;  %532 = vmatpush3.xpose.msra.mxu0 %v162_v8 }
  0x26   :  { %533 = vmatprep.mubr.msk.f32.mxu0 %vm602_vm0, %v601_v0  ;;  %536 = vmatprep.subr.mxu1 %v601_v0 }
  0x27   :  { %541 = vmatprep.subr.mxu0 %v601_v0 }
  0x28   :  { %529 = vmatmul.mubr.f32.vlgmr.msra.gmra.mxu1 %v120_v6  ;;  %534 = vmatmul.mubr.f32.vlgmr.msra.gmra.mxu0 %v121_v7 }
  0x29   :  { %537 = vmatpush3.xpose.msra.mxu1 %v85_v5  ;;  %542 = vmatpush3.xpose.msra.mxu0 %v163_v10 }
  0x2a   :  { %538 = vmatprep.mubr.msk.f32.mxu1 %vm602_vm0, %v601_v0  ;;  %543 = vmatprep.mubr.msk.f32.mxu0 %vm602_vm0, %v601_v0 }
  0x2b   :  { %546 = vmatprep.subr.mxu1 %v601_v0 }
  0x2c   :  { %539 = vmatmul.mubr.f32.vlgmr.msra.gmra.mxu1 %v122_v9  ;;  %544 = vmatmul.mubr.f32.vlgmr.msra.gmra.mxu0 %v120_v6 }
  0x2d   :  { %547 = vmatpush3.xpose.msra.mxu1 %v85_v5  ;;  %548 = vmatprep.mubr.msk.f32.mxu1 %vm602_vm0, %v601_v0 }
  0x30   :  { %549 = vmatmul.mubr.f32.vlgmr.msra.gmra.mxu1 %v120_v6 }
  0xe4   :  { %v126_v16 = vpop.f32.mrf.mxu0 }
  0xe5   :  { %v127_v17 = vadd.f32 %v508_v15, %v126_v16 }
  0xe6   :  { %v525_v18 = vpop.f32.mrf.mxu0 }
  0xe8   :  { %v202_v19 = vpop.f32.mrf.mxu1  ;;  %v276_v21 = vpop.f32.mrf.mxu0 }
  0xe9   :  { %v203_v20 = vadd.f32 %v202_v19, %v127_v17 }
  0xea   :  { %v530_v22 = vpop.f32.mrf.mxu1  ;;  %v535_v24 = vpop.f32.mrf.mxu0 }
  0xeb   :  { %v277_v23 = vadd.f32 %v276_v21, %v203_v20 }
  0xec   :  { %v350_v25 = vpop.f32.mrf.mxu1  ;;  %v424_v27 = vpop.f32.mrf.mxu0 }
  0xed   :  { %v351_v26 = vadd.f32 %v350_v25, %v277_v23 }
  0xee   :  { %v540_v28 = vpop.f32.mrf.mxu1  ;;  %v545_v30 = vpop.f32.mrf.mxu0 }
  0xef   :  { %v425_v29 = vadd.f32 %v424_v27, %v351_v26 }
  0xf0   :  { %v496_v31 = vpop.f32.mrf.mxu1 }
  0xf1   :  { %v497_v32 = vadd.f32 %v496_v31, %v425_v29 }
  0xf2   :  { %v550_v33 = vpop.f32.mrf.mxu1 }
  0xf3   :  { %501 = vst.msk [vmem:[%s644_s3] sm:$0xff] %vm500_vm2, %v497_v32 }
  0xf4   :  { %506 = vsyncpa [#allocation3], 1 }
  0xf5   :  { %507 = vsyncpa [#allocation5], 1 }

</bundles_post_ra>
